<compile_context>
chip_gen: v5e
topology: v5e:2x2
jax: 0.10.0
libtpu: 0.0.40
codegen_flags: <defaults>
</compile_context>

<pallas_src>
import functools

import jax
import jax.numpy as jnp
from jax.experimental import pallas as pl
from jax.experimental.pallas import tpu as pltpu

_VMEM_LIMIT = 32 * 1024 * 1024  # safe on v5e/v6e/v7x; blocks below are << this


def _round_up(x, m):
    return ((x + m - 1) // m) * m


# ---------------------------------------------------------------------------
# Kernel 1: backbone conv-as-matmul (+bias+ReLU), tiled over rows.
# ---------------------------------------------------------------------------
def _mm_bias_relu_kernel(x_ref, w_ref, b_ref, o_ref):
    """o = relu(x @ w + b); x:(TM,K) bf16, w:(K,N) bf16, b:(1,N) f32."""
    acc = jnp.dot(x_ref[...], w_ref[...], preferred_element_type=jnp.float32)
    o_ref[...] = jnp.maximum(acc + b_ref[...], 0.0).astype(o_ref.dtype)


def conv_mm_relu(p, w, b, tile_m=8192):
    M, K = p.shape
    N = w.shape[1]
    tm = min(tile_m, _round_up(M, 128))
    Mp = _round_up(M, tm)
    if Mp != M:                      # guarded: no copy when already aligned
        p = jnp.pad(p, ((0, Mp - M), (0, 0)))
    out = pl.pallas_call(
        _mm_bias_relu_kernel,
        out_shape=jax.ShapeDtypeStruct((Mp, N), jnp.bfloat16),
        grid=(Mp // tm,),
        in_specs=[
            pl.BlockSpec((tm, K), lambda i: (i, 0)),
            pl.BlockSpec((K, N), lambda i: (0, 0)),   # resident weight
            pl.BlockSpec((1, N), lambda i: (0, 0)),   # resident bias
        ],
        out_specs=pl.BlockSpec((tm, N), lambda i: (i, 0)),
        compiler_params=pltpu.CompilerParams(
            dimension_semantics=("parallel",),
            vmem_limit_bytes=_VMEM_LIMIT),
    )(p.astype(jnp.bfloat16), w.astype(jnp.bfloat16),
      b.reshape(1, N).astype(jnp.float32))
    return out[:M] if Mp != M else out


# ---------------------------------------------------------------------------
# Kernel 2: fused rot + trans heads, per-image, patches built in-kernel.
#
# The padded feature map of one image is flattened row-major to (Hp*Wp, C).
# For output pixel (y, x) (flat index m = y*Wp + x) and tap (dy, dx), the
# needed input row is m + dy*Wp + dx, so each tap is a contiguous row-slice
# of the SAME VMEM block -> 9 shifted dots, no im2col. Columns x >= Wf are
# "wrap" garbage: sliced off for rot, masked before the trans GAP.
# ---------------------------------------------------------------------------
def _fused_heads_kernel(feat_ref, w_ref, tb_ref, rb_ref, fcw_ref, fcb_ref,
                        rot_ref, trans_ref, *, hf, wf, wp, c_tr, c_rot):
    n = hf * wp
    acc = None
    for s in range(9):                                 # static unroll, 9 taps
        dy, dx = divmod(s, 3)
        off = dy * wp + dx
        patch = feat_ref[0, pl.ds(off, n), :]          # (n, C) bf16, row slice
        contrib = jax.lax.dot_general(                 # (c_tr+c_rot, n) f32
            w_ref[s], patch, (((1,), (1,)), ((), ())),
            preferred_element_type=jnp.float32)
        acc = contrib if acc is None else acc + contrib

    # rot head: bias only, lane-dense (c_rot, n), garbage cols sliced later.
    rot_ref[0] = acc[c_tr:] + rb_ref[...]

    # trans head: bias + ReLU, mask wrap columns, GAP, FC -- all in-kernel.
    tr = jnp.maximum(acc[:c_tr] + tb_ref[...], 0.0)    # (c_tr, n)
    col = jax.lax.broadcasted_iota(jnp.int32, (c_tr, n), 1) % wp
    tr = jnp.where(col < wf, tr, 0.0)                  # drop wrap columns
    pooled = jnp.sum(tr, axis=1, keepdims=True) * (1.0 / (hf * wf))  # (c_tr,1)
    trans_ref[0] = jax.lax.dot_general(                # (8, 1): rows 0..2 used
        fcw_ref[...], pooled, (((1,), (0,)), ((), ())),
        preferred_element_type=jnp.float32) + fcb_ref[...]


def fused_heads(feat_nhwc, params):
    B, Hf, Wf, C = feat_nhwc.shape
    Hp, Wp = Hf + 2, Wf + 2
    N = Hf * Wp
    c_tr = params["tr_b"].shape[0]
    c_rot = params["rot_b"].shape[0]
    c_out = params["fc_b"].shape[0]
    c_all = c_tr + c_rot

    # pad spatially (conv halo) + flatten per image; small extra rows so the
    # last tap's slice stays in-bounds.  No 9x patch materialization.
    featp = jnp.pad(feat_nhwc, ((0, 0), (1, 1), (1, 1), (0, 0)))
    featp = featp.reshape(B, Hp * Wp, C)
    R = _round_up(Hp * Wp + 2, 16)
    featp = jnp.pad(featp, ((0, 0), (0, R - Hp * Wp), (0, 0)))

    # FC weights zero-padded to 8 output rows so the tiny per-image trans
    # result is written as a clean (1, 8, 1) block.
    fcw_pad = jnp.zeros((8, c_tr), jnp.float32).at[:c_out].set(
        params["fc_w"].astype(jnp.float32))
    fcb_pad = jnp.zeros((8, 1), jnp.float32).at[:c_out, 0].set(
        params["fc_b"].astype(jnp.float32))

    kernel = functools.partial(_fused_heads_kernel, hf=Hf, wf=Wf, wp=Wp,
                               c_tr=c_tr, c_rot=c_rot)
    rot_full, trans_pad = pl.pallas_call(
        kernel,
        out_shape=(jax.ShapeDtypeStruct((B, c_rot, N), jnp.float32),
                   jax.ShapeDtypeStruct((B, 8, 1), jnp.float32)),
        grid=(B,),
        in_specs=[
            pl.BlockSpec((1, R, C), lambda b: (b, 0, 0)),       # one image
            pl.BlockSpec((9, c_all, C), lambda b: (0, 0, 0)),   # fused weights
            pl.BlockSpec((c_tr, 1), lambda b: (0, 0)),
            pl.BlockSpec((c_rot, 1), lambda b: (0, 0)),
            pl.BlockSpec((8, c_tr), lambda b: (0, 0)),
            pl.BlockSpec((8, 1), lambda b: (0, 0)),
        ],
        out_specs=(pl.BlockSpec((1, c_rot, N), lambda b: (b, 0, 0)),
                   pl.BlockSpec((1, 8, 1), lambda b: (b, 0, 0))),
        compiler_params=pltpu.CompilerParams(
            dimension_semantics=("parallel",),
            vmem_limit_bytes=_VMEM_LIMIT),
    )(featp,
      params["head_w"].astype(jnp.bfloat16),
      params["tr_b"].reshape(c_tr, 1).astype(jnp.float32),
      params["rot_b"].reshape(c_rot, 1).astype(jnp.float32),
      fcw_pad, fcb_pad)

    # (B, c_rot, Hf*Wp) -> NCHW maps directly; drop the wrap columns.
    out_poses = rot_full.reshape(B, c_rot, Hf, Wp)[..., :Wf]
    trans = trans_pad[:, :c_out, 0]
    return out_poses, trans


# ---------------------------------------------------------------------------
# Glue: im2col only for the stride-2 backbone (K=27; small).
# ---------------------------------------------------------------------------
def im2col(x_nhwc, ksize=3, stride=1, pad=1):
    B, H, W, C = x_nhwc.shape
    xp = jnp.pad(x_nhwc, ((0, 0), (pad, pad), (pad, pad), (0, 0)))
    Ho = (H + 2 * pad - ksize) // stride + 1
    Wo = (W + 2 * pad - ksize) // stride + 1
    cols = []
    for dy in range(ksize):
        for dx in range(ksize):
            cols.append(xp[:, dy:dy + stride * Ho:stride,
                           dx:dx + stride * Wo:stride, :])
    patches = jnp.concatenate(cols, axis=-1)      # K order = [dy, dx, Cin]
    return patches.reshape(B * Ho * Wo, ksize * ksize * C), Ho, Wo


# ---------------------------------------------------------------------------
# Params & forward
# ---------------------------------------------------------------------------
def init_params(key, cin=3, c_feat=32, c_rot=4, c_trans=16, c_out=3, ksize=3):
    ks = jax.random.split(key, 7)
    s = 0.05
    kk = ksize * ksize
    return dict(
        bb_w=jax.random.normal(ks[0], (kk * cin, c_feat), jnp.float32) * s,
        bb_b=jax.random.normal(ks[1], (c_feat,), jnp.float32) * s,
        # fused head conv weight: [tap, (trans rows ; rot rows), Cin]
        head_w=jax.random.normal(ks[2], (kk, c_trans + c_rot, c_feat),
                                 jnp.float32) * s,
        tr_b=jax.random.normal(ks[3], (c_trans,), jnp.float32) * s,
        rot_b=jax.random.normal(ks[4], (c_rot,), jnp.float32) * s,
        fc_w=jax.random.normal(ks[5], (c_out, c_trans), jnp.float32) * s,
        fc_b=jax.random.normal(ks[6], (c_out,), jnp.float32) * s,
    )


def modi_cdpn_forward(x_nchw, params, tile_m=8192):
    """x_nchw: (B,Cin,H,W) f32 -> (out_poses (B,C_rot,H/2,W/2), trans (B,3))."""
    B = x_nchw.shape[0]
    c_feat = params["bb_w"].shape[1]
    x = jnp.transpose(x_nchw, (0, 2, 3, 1)).astype(jnp.bfloat16)   # NHWC bf16

    # backbone: conv3x3 stride 2, pad 1, ReLU (im2col + tiled matmul)
    pb, Hf, Wf = im2col(x, ksize=3, stride=2, pad=1)
    feat = conv_mm_relu(pb, params["bb_w"], params["bb_b"], tile_m)
    feat_nhwc = feat.reshape(B, Hf, Wf, c_feat)

    # fused rot + trans heads (in-kernel 3x3 patches, GAP + FC folded in)
    return fused_heads(feat_nhwc, params)


# ---------------------------------------------------------------------------
# Pure-JAX reference (matches the kernel's bf16 streaming / f32 accumulate)
# ---------------------------------------------------------------------------
def reference_forward(x_nchw, params):
    f32 = jnp.float32

    def bf(a):
        return a.astype(jnp.bfloat16).astype(f32)

    B, Cin, H, W = x_nchw.shape
    c_feat = params["bb_w"].shape[1]
    c_tr = params["tr_b"].shape[0]
    c_rot = params["rot_b"].shape[0]

    x = bf(jnp.transpose(x_nchw, (0, 2, 3, 1)))
    bb_w = bf(params["bb_w"]).reshape(3, 3, Cin, c_feat)            # HWIO
    feat = jax.lax.conv_general_dilated(
        x, bb_w, (2, 2), [(1, 1), (1, 1)],
        dimension_numbers=("NHWC", "HWIO", "NHWC"),
        precision=jax.lax.Precision.HIGHEST)
    feat = bf(jnp.maximum(feat + params["bb_b"], 0.0))

    hw = bf(params["head_w"]).reshape(3, 3, c_tr + c_rot, c_feat)
    hw = jnp.transpose(hw, (0, 1, 3, 2))                            # HWIO
    ho = jax.lax.conv_general_dilated(
        feat, hw, (1, 1), [(1, 1), (1, 1)],
        dimension_numbers=("NHWC", "HWIO", "NHWC"),
        precision=jax.lax.Precision.HIGHEST)
    tr = jnp.maximum(ho[..., :c_tr] + params["tr_b"], 0.0)
    rot = ho[..., c_tr:] + params["rot_b"]
    out_poses = jnp.transpose(rot, (0, 3, 1, 2))
    pooled = jnp.mean(tr, axis=(1, 2))
    trans = pooled @ params["fc_w"].T + params["fc_b"]
    return out_poses, trans


if __name__ == "__main__":
    key = jax.random.PRNGKey(0)
    k_x, k_p = jax.random.split(key)

    # small, CDPN-consistent input: RGB image batch, NCHW like PyTorch
    x = jax.random.normal(k_x, (2, 3, 16, 16), jnp.float32)
    params = init_params(k_p)

    out_poses, trans = jax.jit(modi_cdpn_forward)(x, params)
    jax.block_until_ready((out_poses, trans))

    assert out_poses.shape == (2, 4, 8, 8), out_poses.shape
    assert trans.shape == (2, 3), trans.shape
    assert bool(jnp.all(jnp.isfinite(out_poses))), "non-finite rot output"
    assert bool(jnp.all(jnp.isfinite(trans))), "non-finite trans output"

    ref_poses, ref_trans = reference_forward(x, params)
    assert jnp.allclose(out_poses, ref_poses, atol=5e-3, rtol=5e-2), float(
        jnp.max(jnp.abs(out_poses - ref_poses)))
    assert jnp.allclose(trans, ref_trans, atol=5e-3, rtol=5e-2), float(
        jnp.max(jnp.abs(trans - ref_trans)))

    print("KERNEL_OK")
</pallas_src>

<mosaic_0001>
module attributes {stable_mosaic.version = 11 : i64} {
  func.func @_mm_bias_relu_kernel(%arg0: i32, %arg1: memref<128x27xbf16, #tpu.memory_space<vmem>>, %arg2: memref<27x32xbf16, #tpu.memory_space<vmem>>, %arg3: memref<1x32xf32, #tpu.memory_space<vmem>>, %arg4: memref<128x32xbf16, #tpu.memory_space<vmem>>) attributes {dimension_semantics = [#tpu.dimension_semantics<parallel>], iteration_bounds = array<i64: 1>, scalar_prefetch = 0 : i64, scratch_operands = 0 : i64, tpu.core_type = #tpu.core_type<tc>, window_params = [{transform_indices = @transform_0, window_bounds = array<i64: 128, 27>}, {pipeline_mode = #tpu.pipeline_mode<synchronous>, transform_indices = @transform_1, window_bounds = array<i64: 27, 32>}, {pipeline_mode = #tpu.pipeline_mode<synchronous>, transform_indices = @transform_2, window_bounds = array<i64: 1, 32>}, {transform_indices = @transform_3, window_bounds = array<i64: 128, 32>}]} {
    %c0 = arith.constant 0 : index
    %c0_0 = arith.constant 0 : index
    %0 = vector.load %arg1[%c0, %c0_0] : memref<128x27xbf16, #tpu.memory_space<vmem>>, vector<128x27xbf16>
    %c0_1 = arith.constant 0 : index
    %c0_2 = arith.constant 0 : index
    %1 = vector.load %arg2[%c0_1, %c0_2] : memref<27x32xbf16, #tpu.memory_space<vmem>>, vector<27x32xbf16>
    %cst = arith.constant dense<0.000000e+00> : vector<128x32xf32>
    %2 = tpu.matmul %0, %1, %cst {dimension_numbers = #tpu.dot_dimension_numbers<[1], [0], [0], [1], [0, 0, 1, 1], [], []>} : vector<128x27xbf16>, vector<27x32xbf16>, vector<128x32xf32> -> vector<128x32xf32>
    %c0_3 = arith.constant 0 : index
    %c0_4 = arith.constant 0 : index
    %3 = vector.load %arg3[%c0_3, %c0_4] : memref<1x32xf32, #tpu.memory_space<vmem>>, vector<1x32xf32>
    %4 = vector.broadcast %3 : vector<1x32xf32> to vector<128x32xf32>
    %5 = arith.addf %2, %4 : vector<128x32xf32>
    %cst_5 = arith.constant 0.000000e+00 : f32
    %6 = vector.broadcast %cst_5 : f32 to vector<128x32xf32>
    %7 = arith.maximumf %5, %6 : vector<128x32xf32>
    %8 = arith.truncf %7 : vector<128x32xf32> to vector<128x32xbf16>
    %c0_6 = arith.constant 0 : index
    %c0_7 = arith.constant 0 : index
    %9 = vector.load %arg4[%c0_6, %c0_7] : memref<128x32xbf16, #tpu.memory_space<vmem>>, vector<128x32xbf16>
    tpu.vector_store %arg4[%c0_6, %c0_7], %8 {strides = array<i32>} : memref<128x32xbf16, #tpu.memory_space<vmem>>, vector<128x32xbf16>,
    return
  }
  func.func @transform_0(%arg0: i32) -> (i32, i32) {
    %c0_i32 = arith.constant 0 : i32
    %c0_i32_0 = arith.constant 0 : i32
    return %arg0, %c0_i32 : i32, i32
  }
  func.func @transform_1(%arg0: i32) -> (i32, i32) {
    %c0_i32 = arith.constant 0 : i32
    %c0_i32_0 = arith.constant 0 : i32
    %c0_i32_1 = arith.constant 0 : i32
    return %c0_i32, %c0_i32_0 : i32, i32
  }
  func.func @transform_2(%arg0: i32) -> (i32, i32) {
    %c0_i32 = arith.constant 0 : i32
    %c0_i32_0 = arith.constant 0 : i32
    %c0_i32_1 = arith.constant 0 : i32
    return %c0_i32, %c0_i32_0 : i32, i32
  }
  func.func @transform_3(%arg0: i32) -> (i32, i32) {
    %c0_i32 = arith.constant 0 : i32
    %c0_i32_0 = arith.constant 0 : i32
    return %arg0, %c0_i32 : i32, i32
  }
}

module attributes {stable_mosaic.version = 11 : i64} {
  func.func @_fused_heads_kernel(%arg0: i32, %arg1: memref<1x112x32xbf16, #tpu.memory_space<vmem>>, %arg2: memref<9x20x32xbf16, #tpu.memory_space<vmem>>, %arg3: memref<16x1xf32, #tpu.memory_space<vmem>>, %arg4: memref<4x1xf32, #tpu.memory_space<vmem>>, %arg5: memref<8x16xf32, #tpu.memory_space<vmem>>, %arg6: memref<8x1xf32, #tpu.memory_space<vmem>>, %arg7: memref<1x4x80xf32, #tpu.memory_space<vmem>>, %arg8: memref<1x8x1xf32, #tpu.memory_space<vmem>>) attributes {dimension_semantics = [#tpu.dimension_semantics<parallel>], iteration_bounds = array<i64: 2>, scalar_prefetch = 0 : i64, scratch_operands = 0 : i64, tpu.core_type = #tpu.core_type<tc>, window_params = [{transform_indices = @transform_0, window_bounds = array<i64: 1, 112, 32>}, {pipeline_mode = #tpu.pipeline_mode<synchronous>, transform_indices = @transform_1, window_bounds = array<i64: 9, 20, 32>}, {pipeline_mode = #tpu.pipeline_mode<synchronous>, transform_indices = @transform_2, window_bounds = array<i64: 16, 1>}, {pipeline_mode = #tpu.pipeline_mode<synchronous>, transform_indices = @transform_3, window_bounds = array<i64: 4, 1>}, {pipeline_mode = #tpu.pipeline_mode<synchronous>, transform_indices = @transform_4, window_bounds = array<i64: 8, 16>}, {pipeline_mode = #tpu.pipeline_mode<synchronous>, transform_indices = @transform_5, window_bounds = array<i64: 8, 1>}, {transform_indices = @transform_6, window_bounds = array<i64: 1, 4, 80>}, {transform_indices = @transform_7, window_bounds = array<i64: 1, 8, 1>}]} {
    %c0 = arith.constant 0 : index
    %c0_0 = arith.constant 0 : index
    %c0_1 = arith.constant 0 : index
    %0 = vector.load %arg1[%c0, %c0_0, %c0_1] : memref<1x112x32xbf16, #tpu.memory_space<vmem>>, vector<1x80x32xbf16>
    %1 = vector.shape_cast %0 : vector<1x80x32xbf16> to vector<80x32xbf16>
    %c0_2 = arith.constant 0 : index
    %c0_3 = arith.constant 0 : index
    %c0_4 = arith.constant 0 : index
    %2 = vector.load %arg2[%c0_2, %c0_3, %c0_4] : memref<9x20x32xbf16, #tpu.memory_space<vmem>>, vector<1x20x32xbf16>
    %3 = vector.shape_cast %2 : vector<1x20x32xbf16> to vector<20x32xbf16>
    %cst = arith.constant dense<0.000000e+00> : vector<20x80xf32>
    %4 = tpu.matmul %3, %1, %cst {dimension_numbers = #tpu.dot_dimension_numbers<[1], [1], [0], [0], [0, 0, 1, 0], [], []>} : vector<20x32xbf16>, vector<80x32xbf16>, vector<20x80xf32> -> vector<20x80xf32>
    %c0_5 = arith.constant 0 : index
    %c1 = arith.constant 1 : index
    %c0_6 = arith.constant 0 : index
    %5 = vector.load %arg1[%c0_5, %c1, %c0_6] : memref<1x112x32xbf16, #tpu.memory_space<vmem>>, vector<1x80x32xbf16>
    %6 = vector.shape_cast %5 : vector<1x80x32xbf16> to vector<80x32xbf16>
    %c1_7 = arith.constant 1 : index
    %c0_8 = arith.constant 0 : index
    %c0_9 = arith.constant 0 : index
    %7 = vector.load %arg2[%c1_7, %c0_8, %c0_9] : memref<9x20x32xbf16, #tpu.memory_space<vmem>>, vector<1x20x32xbf16>
    %8 = vector.shape_cast %7 : vector<1x20x32xbf16> to vector<20x32xbf16>
    %cst_10 = arith.constant dense<0.000000e+00> : vector<20x80xf32>
    %9 = tpu.matmul %8, %6, %cst_10 {dimension_numbers = #tpu.dot_dimension_numbers<[1], [1], [0], [0], [0, 0, 1, 0], [], []>} : vector<20x32xbf16>, vector<80x32xbf16>, vector<20x80xf32> -> vector<20x80xf32>
    %10 = arith.addf %4, %9 : vector<20x80xf32>
    %c0_11 = arith.constant 0 : index
    %c2 = arith.constant 2 : index
    %c0_12 = arith.constant 0 : index
    %11 = vector.load %arg1[%c0_11, %c2, %c0_12] : memref<1x112x32xbf16, #tpu.memory_space<vmem>>, vector<1x80x32xbf16>
    %12 = vector.shape_cast %11 : vector<1x80x32xbf16> to vector<80x32xbf16>
    %c2_13 = arith.constant 2 : index
    %c0_14 = arith.constant 0 : index
    %c0_15 = arith.constant 0 : index
    %13 = vector.load %arg2[%c2_13, %c0_14, %c0_15] : memref<9x20x32xbf16, #tpu.memory_space<vmem>>, vector<1x20x32xbf16>
    %14 = vector.shape_cast %13 : vector<1x20x32xbf16> to vector<20x32xbf16>
    %cst_16 = arith.constant dense<0.000000e+00> : vector<20x80xf32>
    %15 = tpu.matmul %14, %12, %cst_16 {dimension_numbers = #tpu.dot_dimension_numbers<[1], [1], [0], [0], [0, 0, 1, 0], [], []>} : vector<20x32xbf16>, vector<80x32xbf16>, vector<20x80xf32> -> vector<20x80xf32>
    %16 = arith.addf %10, %15 : vector<20x80xf32>
    %c0_17 = arith.constant 0 : index
    %c10 = arith.constant 10 : index
    %c0_18 = arith.constant 0 : index
    %17 = vector.load %arg1[%c0_17, %c10, %c0_18] : memref<1x112x32xbf16, #tpu.memory_space<vmem>>, vector<1x80x32xbf16>
    %18 = vector.shape_cast %17 : vector<1x80x32xbf16> to vector<80x32xbf16>
    %c3 = arith.constant 3 : index
    %c0_19 = arith.constant 0 : index
    %c0_20 = arith.constant 0 : index
    %19 = vector.load %arg2[%c3, %c0_19, %c0_20] : memref<9x20x32xbf16, #tpu.memory_space<vmem>>, vector<1x20x32xbf16>
    %20 = vector.shape_cast %19 : vector<1x20x32xbf16> to vector<20x32xbf16>
    %cst_21 = arith.constant dense<0.000000e+00> : vector<20x80xf32>
    %21 = tpu.matmul %20, %18, %cst_21 {dimension_numbers = #tpu.dot_dimension_numbers<[1], [1], [0], [0], [0, 0, 1, 0], [], []>} : vector<20x32xbf16>, vector<80x32xbf16>, vector<20x80xf32> -> vector<20x80xf32>
    %22 = arith.addf %16, %21 : vector<20x80xf32>
    %c0_22 = arith.constant 0 : index
    %c11 = arith.constant 11 : index
    %c0_23 = arith.constant 0 : index
    %23 = vector.load %arg1[%c0_22, %c11, %c0_23] : memref<1x112x32xbf16, #tpu.memory_space<vmem>>, vector<1x80x32xbf16>
    %24 = vector.shape_cast %23 : vector<1x80x32xbf16> to vector<80x32xbf16>
    %c4 = arith.constant 4 : index
    %c0_24 = arith.constant 0 : index
    %c0_25 = arith.constant 0 : index
    %25 = vector.load %arg2[%c4, %c0_24, %c0_25] : memref<9x20x32xbf16, #tpu.memory_space<vmem>>, vector<1x20x32xbf16>
    %26 = vector.shape_cast %25 : vector<1x20x32xbf16> to vector<20x32xbf16>
    %cst_26 = arith.constant dense<0.000000e+00> : vector<20x80xf32>
    %27 = tpu.matmul %26, %24, %cst_26 {dimension_numbers = #tpu.dot_dimension_numbers<[1], [1], [0], [0], [0, 0, 1, 0], [], []>} : vector<20x32xbf16>, vector<80x32xbf16>, vector<20x80xf32> -> vector<20x80xf32>
    %28 = arith.addf %22, %27 : vector<20x80xf32>
    %c0_27 = arith.constant 0 : index
    %c12 = arith.constant 12 : index
    %c0_28 = arith.constant 0 : index
    %29 = vector.load %arg1[%c0_27, %c12, %c0_28] : memref<1x112x32xbf16, #tpu.memory_space<vmem>>, vector<1x80x32xbf16>
    %30 = vector.shape_cast %29 : vector<1x80x32xbf16> to vector<80x32xbf16>
    %c5 = arith.constant 5 : index
    %c0_29 = arith.constant 0 : index
    %c0_30 = arith.constant 0 : index
    %31 = vector.load %arg2[%c5, %c0_29, %c0_30] : memref<9x20x32xbf16, #tpu.memory_space<vmem>>, vector<1x20x32xbf16>
    %32 = vector.shape_cast %31 : vector<1x20x32xbf16> to vector<20x32xbf16>
    %cst_31 = arith.constant dense<0.000000e+00> : vector<20x80xf32>
    %33 = tpu.matmul %32, %30, %cst_31 {dimension_numbers = #tpu.dot_dimension_numbers<[1], [1], [0], [0], [0, 0, 1, 0], [], []>} : vector<20x32xbf16>, vector<80x32xbf16>, vector<20x80xf32> -> vector<20x80xf32>
    %34 = arith.addf %28, %33 : vector<20x80xf32>
    %c0_32 = arith.constant 0 : index
    %c20 = arith.constant 20 : index
    %c0_33 = arith.constant 0 : index
    %35 = vector.load %arg1[%c0_32, %c20, %c0_33] : memref<1x112x32xbf16, #tpu.memory_space<vmem>>, vector<1x80x32xbf16>
    %36 = vector.shape_cast %35 : vector<1x80x32xbf16> to vector<80x32xbf16>
    %c6 = arith.constant 6 : index
    %c0_34 = arith.constant 0 : index
    %c0_35 = arith.constant 0 : index
    %37 = vector.load %arg2[%c6, %c0_34, %c0_35] : memref<9x20x32xbf16, #tpu.memory_space<vmem>>, vector<1x20x32xbf16>
    %38 = vector.shape_cast %37 : vector<1x20x32xbf16> to vector<20x32xbf16>
    %cst_36 = arith.constant dense<0.000000e+00> : vector<20x80xf32>
    %39 = tpu.matmul %38, %36, %cst_36 {dimension_numbers = #tpu.dot_dimension_numbers<[1], [1], [0], [0], [0, 0, 1, 0], [], []>} : vector<20x32xbf16>, vector<80x32xbf16>, vector<20x80xf32> -> vector<20x80xf32>
    %40 = arith.addf %34, %39 : vector<20x80xf32>
    %c0_37 = arith.constant 0 : index
    %c21 = arith.constant 21 : index
    %c0_38 = arith.constant 0 : index
    %41 = vector.load %arg1[%c0_37, %c21, %c0_38] : memref<1x112x32xbf16, #tpu.memory_space<vmem>>, vector<1x80x32xbf16>
    %42 = vector.shape_cast %41 : vector<1x80x32xbf16> to vector<80x32xbf16>
    %c7 = arith.constant 7 : index
    %c0_39 = arith.constant 0 : index
    %c0_40 = arith.constant 0 : index
    %43 = vector.load %arg2[%c7, %c0_39, %c0_40] : memref<9x20x32xbf16, #tpu.memory_space<vmem>>, vector<1x20x32xbf16>
    %44 = vector.shape_cast %43 : vector<1x20x32xbf16> to vector<20x32xbf16>
    %cst_41 = arith.constant dense<0.000000e+00> : vector<20x80xf32>
    %45 = tpu.matmul %44, %42, %cst_41 {dimension_numbers = #tpu.dot_dimension_numbers<[1], [1], [0], [0], [0, 0, 1, 0], [], []>} : vector<20x32xbf16>, vector<80x32xbf16>, vector<20x80xf32> -> vector<20x80xf32>
    %46 = arith.addf %40, %45 : vector<20x80xf32>
    %c0_42 = arith.constant 0 : index
    %c22 = arith.constant 22 : index
    %c0_43 = arith.constant 0 : index
    %47 = vector.load %arg1[%c0_42, %c22, %c0_43] : memref<1x112x32xbf16, #tpu.memory_space<vmem>>, vector<1x80x32xbf16>
    %48 = vector.shape_cast %47 : vector<1x80x32xbf16> to vector<80x32xbf16>
    %c8 = arith.constant 8 : index
    %c0_44 = arith.constant 0 : index
    %c0_45 = arith.constant 0 : index
    %49 = vector.load %arg2[%c8, %c0_44, %c0_45] : memref<9x20x32xbf16, #tpu.memory_space<vmem>>, vector<1x20x32xbf16>
    %50 = vector.shape_cast %49 : vector<1x20x32xbf16> to vector<20x32xbf16>
    %cst_46 = arith.constant dense<0.000000e+00> : vector<20x80xf32>
    %51 = tpu.matmul %50, %48, %cst_46 {dimension_numbers = #tpu.dot_dimension_numbers<[1], [1], [0], [0], [0, 0, 1, 0], [], []>} : vector<20x32xbf16>, vector<80x32xbf16>, vector<20x80xf32> -> vector<20x80xf32>
    %52 = arith.addf %46, %51 : vector<20x80xf32>
    %53 = vector.extract_strided_slice %52 {offsets = [16, 0], sizes = [4, 80], strides = [1, 1]} : vector<20x80xf32> to vector<4x80xf32>
    %c0_47 = arith.constant 0 : index
    %c0_48 = arith.constant 0 : index
    %54 = vector.load %arg4[%c0_47, %c0_48] : memref<4x1xf32, #tpu.memory_space<vmem>>, vector<4x1xf32>
    %55 = vector.broadcast %54 : vector<4x1xf32> to vector<4x80xf32>
    %56 = arith.addf %53, %55 : vector<4x80xf32>
    %c0_49 = arith.constant 0 : index
    %c0_50 = arith.constant 0 : index
    %c0_51 = arith.constant 0 : index
    %57 = vector.load %arg7[%c0_49, %c0_50, %c0_51] : memref<1x4x80xf32, #tpu.memory_space<vmem>>, vector<1x4x80xf32>
    %58 = vector.shape_cast %57 : vector<1x4x80xf32> to vector<4x80xf32>
    %59 = vector.shape_cast %56 : vector<4x80xf32> to vector<1x4x80xf32>
    tpu.vector_store %arg7[%c0_49, %c0_50, %c0_51], %59 {strides = array<i32>} : memref<1x4x80xf32, #tpu.memory_space<vmem>>, vector<1x4x80xf32>,
    %60 = vector.extract_strided_slice %52 {offsets = [0, 0], sizes = [16, 80], strides = [1, 1]} : vector<20x80xf32> to vector<16x80xf32>
    %c0_52 = arith.constant 0 : index
    %c0_53 = arith.constant 0 : index
    %61 = vector.load %arg3[%c0_52, %c0_53] : memref<16x1xf32, #tpu.memory_space<vmem>>, vector<16x1xf32>
    %62 = vector.broadcast %61 : vector<16x1xf32> to vector<16x80xf32>
    %63 = arith.addf %60, %62 : vector<16x80xf32>
    %cst_54 = arith.constant 0.000000e+00 : f32
    %64 = vector.broadcast %cst_54 : f32 to vector<16x80xf32>
    %65 = arith.maximumf %63, %64 : vector<16x80xf32>
    %66 = tpu.iota {dimensions = array<i32: 1>} : vector<16x80xi32>
    %c10_i32 = arith.constant 10 : i32
    %c0_i32 = arith.constant 0 : i32
    %67 = arith.cmpi eq, %c10_i32, %c0_i32 : i32
    %c1_i32 = arith.constant 1 : i32
    %68 = arith.select %67, %c1_i32, %c10_i32 : i32
    %69 = vector.broadcast %68 : i32 to vector<16x80xi32>
    %70 = arith.remsi %66, %69 : vector<16x80xi32>
    %c0_i32_55 = arith.constant 0 : i32
    %71 = vector.broadcast %c0_i32_55 : i32 to vector<16x80xi32>
    %72 = arith.cmpi ne, %70, %71 : vector<16x80xi32>
    %c0_i32_56 = arith.constant 0 : i32
    %73 = vector.broadcast %c0_i32_56 : i32 to vector<16x80xi32>
    %74 = arith.cmpi slt, %70, %73 : vector<16x80xi32>
    %c0_i32_57 = arith.constant 0 : i32
    %75 = arith.cmpi slt, %68, %c0_i32_57 : i32
    %76 = vector.broadcast %75 : i1 to vector<16x80xi1>
    %77 = vector.broadcast %76 : vector<16x80xi1> to vector<16x80xi1>
    %78 = arith.xori %74, %77 : vector<16x80xi1>
    %79 = arith.andi %78, %72 : vector<16x80xi1>
    %80 = vector.broadcast %68 : i32 to vector<16x80xi32>
    %81 = arith.addi %70, %80 : vector<16x80xi32>
    %82 = arith.select %79, %81, %70 : vector<16x80xi1>, vector<16x80xi32>
    %c8_i32 = arith.constant 8 : i32
    %83 = vector.broadcast %c8_i32 : i32 to vector<16x80xi32>
    %84 = arith.cmpi slt, %82, %83 : vector<16x80xi32>
    %cst_58 = arith.constant 0.000000e+00 : f32
    %85 = vector.broadcast %cst_58 : f32 to vector<16x80xf32>
    %86 = arith.select %84, %65, %85 : vector<16x80xi1>, vector<16x80xf32>
    %cst_59 = arith.constant dense<0.000000e+00> : vector<16xf32>
    %87 = vector.multi_reduction <add>, %86, %cst_59 [1] : vector<16x80xf32> to vector<16xf32>
    %88 = vector.shape_cast %87 : vector<16xf32> to vector<16x1xf32>
    %cst_60 = arith.constant 1.562500e-02 : f32
    %89 = vector.broadcast %cst_60 : f32 to vector<16x1xf32>
    %90 = arith.mulf %88, %89 : vector<16x1xf32>
    %c0_61 = arith.constant 0 : index
    %c0_62 = arith.constant 0 : index
    %91 = vector.load %arg5[%c0_61, %c0_62] : memref<8x16xf32, #tpu.memory_space<vmem>>, vector<8x16xf32>
    %cst_63 = arith.constant dense<0.000000e+00> : vector<8x1xf32>
    %92 = tpu.matmul %91, %90, %cst_63 {dimension_numbers = #tpu.dot_dimension_numbers<[1], [0], [0], [1], [0, 0, 1, 1], [], []>} : vector<8x16xf32>, vector<16x1xf32>, vector<8x1xf32> -> vector<8x1xf32>
    %c0_64 = arith.constant 0 : index
    %c0_65 = arith.constant 0 : index
    %93 = vector.load %arg6[%c0_64, %c0_65] : memref<8x1xf32, #tpu.memory_space<vmem>>, vector<8x1xf32>
    %94 = arith.addf %92, %93 : vector<8x1xf32>
    %c0_66 = arith.constant 0 : index
    %c0_67 = arith.constant 0 : index
    %c0_68 = arith.constant 0 : index
    %95 = vector.load %arg8[%c0_66, %c0_67, %c0_68] : memref<1x8x1xf32, #tpu.memory_space<vmem>>, vector<1x8x1xf32>
    %96 = vector.shape_cast %95 : vector<1x8x1xf32> to vector<8x1xf32>
    %97 = vector.shape_cast %94 : vector<8x1xf32> to vector<1x8x1xf32>
    tpu.vector_store %arg8[%c0_66, %c0_67, %c0_68], %97 {strides = array<i32>} : memref<1x8x1xf32, #tpu.memory_space<vmem>>, vector<1x8x1xf32>,
    return
  }
  func.func @transform_0(%arg0: i32) -> (i32, i32, i32) {
    %c0_i32 = arith.constant 0 : i32
    %c0_i32_0 = arith.constant 0 : i32
    %c0_i32_1 = arith.constant 0 : i32
    return %arg0, %c0_i32, %c0_i32_0 : i32, i32, i32
  }
  func.func @transform_1(%arg0: i32) -> (i32, i32, i32) {
    %c0_i32 = arith.constant 0 : i32
    %c0_i32_0 = arith.constant 0 : i32
    %c0_i32_1 = arith.constant 0 : i32
    %c0_i32_2 = arith.constant 0 : i32
    return %c0_i32, %c0_i32_0, %c0_i32_1 : i32, i32, i32
  }
  func.func @transform_2(%arg0: i32) -> (i32, i32) {
    %c0_i32 = arith.constant 0 : i32
    %c0_i32_0 = arith.constant 0 : i32
    %c0_i32_1 = arith.constant 0 : i32
    return %c0_i32, %c0_i32_0 : i32, i32
  }
  func.func @transform_3(%arg0: i32) -> (i32, i32) {
    %c0_i32 = arith.constant 0 : i32
    %c0_i32_0 = arith.constant 0 : i32
    %c0_i32_1 = arith.constant 0 : i32
    return %c0_i32, %c0_i32_0 : i32, i32
  }
  func.func @transform_4(%arg0: i32) -> (i32, i32) {
    %c0_i32 = arith.constant 0 : i32
    %c0_i32_0 = arith.constant 0 : i32
    %c0_i32_1 = arith.constant 0 : i32
    return %c0_i32, %c0_i32_0 : i32, i32
  }
  func.func @transform_5(%arg0: i32) -> (i32, i32) {
    %c0_i32 = arith.constant 0 : i32
    %c0_i32_0 = arith.constant 0 : i32
    %c0_i32_1 = arith.constant 0 : i32
    return %c0_i32, %c0_i32_0 : i32, i32
  }
  func.func @transform_6(%arg0: i32) -> (i32, i32, i32) {
    %c0_i32 = arith.constant 0 : i32
    %c0_i32_0 = arith.constant 0 : i32
    %c0_i32_1 = arith.constant 0 : i32
    return %arg0, %c0_i32, %c0_i32_0 : i32, i32, i32
  }
  func.func @transform_7(%arg0: i32) -> (i32, i32, i32) {
    %c0_i32 = arith.constant 0 : i32
    %c0_i32_0 = arith.constant 0 : i32
    %c0_i32_1 = arith.constant 0 : i32
    return %arg0, %c0_i32, %c0_i32_0 : i32, i32, i32
  }
}

</mosaic_0001>

<bundles_post_ra>
// kernel: modi_cdpn_forward.2
= control target key start
LH: loop header
LB: loop body
LE: loop exit
PB: predicated region body
PF: predicated region fallthrough
CT: control target
= control target key end

     0   :  { %vm115_vm0 = vcmask 1044480   ;;  %vm116_vm1 = vcmask 1045504   ;;  %v290_v2 = vmov 65535   ;;  %vm90_vm2 = vcmask 220160   ;;  %s437_s1 = inlined_call_operand.vmem [shape: bf16[27,32], index: 1, kind: input, shape index: {}]   ;;  %s438_s2 = inlined_call_operand.vmem [shape: f32[1,32], index: 2, kind: input, shape index: {}]   ;;  %s439_s0 = inlined_call_operand.vmem [shape: bf16[128,27], index: 0, kind: input, shape index: {}]   ;;  %s440_s3 = inlined_call_operand.vmem [shape: bf16[128,32], index: 3, kind: output, shape index: {}]  }
   0x1   :  { %v262_v0 = vld [vmem:[%s437_s1 + $0x8] sm:$0xf]  ;;  %v281_v1 = vld [vmem:[%s437_s1 + $0x8] sm:$0x30]  ;;  %v117_v3 = vsel %vm115_vm0, 4294967295, %v290_v2  ;;  %v280_v7 = vld [vmem:[%s437_s1] sm:$0xff] }
   0x2   :  { %v263_v4 = vor.u32 %v281_v1, %v262_v0  ;;  %v118_v5 = vsel %vm116_vm1, %v117_v3, 0  ;;  %v272_v8 = vld [vmem:[%s439_s0] sm:$0xff]  ;;  %v274_v9 = vld [vmem:[%s439_s0 + $0x10] sm:$0xff]  ;;  %v273_v12 = vld [vmem:[%s439_s0 + $0x8] sm:$0xff]  ;;  %vm203_vm3 = vcmask 257024  }
   0x3   :  { %v276_v10 = vld [vmem:[%s439_s0 + $0x20] sm:$0xff]  ;;  %v278_v11 = vld [vmem:[%s439_s0 + $0x30] sm:$0xff]  ;;  %v275_v13 = vld [vmem:[%s439_s0 + $0x18] sm:$0xff] }
   0x4   :  { %v120_v6 = vand.u32 %v263_v4, %v118_v5  ;;  %v277_v14 = vld [vmem:[%s439_s0 + $0x28] sm:$0xff]  ;;  %v279_v15 = vld [vmem:[%s439_s0 + $0x38] sm:$0xff]  ;;  %v355_v16 = vld [vmem:[%s438_s2] ss:$0 sm:$0xff] }
   0x6   :  { %128 = vmatpush.bf16.msra.mxu0 %v120_v6  ;;  %282 = vmatpush.bf16.msra.mxu1 %v120_v6 }
   0x7   :  { %283 = vmatpush.bf16.msra.mxu2 %v120_v6  ;;  %284 = vmatpush.bf16.msra.mxu3 %v120_v6 }
   0xa   :  { %129 = vmatpush.bf16.msra.mxu0 %v280_v7  ;;  %285 = vmatpush.bf16.msra.mxu1 %v280_v7 }
   0xb   :  { %286 = vmatpush.bf16.msra.mxu2 %v280_v7  ;;  %287 = vmatpush.bf16.msra.mxu3 %v280_v7 }
   0xd   :  { %264 = vmatmul.msk.bf16.vlgmr.msra.gmra.mxu0 %vm90_vm2, %v272_v8  ;;  %266 = vmatmul.msk.bf16.vlgmr.msra.gmra.mxu1 %vm90_vm2, %v274_v9 }
   0xe   :  { %268 = vmatmul.msk.bf16.vlgmr.msra.gmra.mxu2 %vm90_vm2, %v276_v10  ;;  %270 = vmatmul.msk.bf16.vlgmr.msra.gmra.mxu3 %vm90_vm2, %v278_v11 }
  0x1d   :  { %265 = vmatmul.msk.bf16.gmra.mxu0 %vm90_vm2, %v273_v12  ;;  %267 = vmatmul.msk.bf16.gmra.mxu1 %vm90_vm2, %v275_v13 }
  0x1e   :  { %269 = vmatmul.msk.bf16.gmra.mxu2 %vm90_vm2, %v277_v14  ;;  %271 = vmatmul.msk.bf16.gmra.mxu3 %vm90_vm2, %v279_v15 }
  0x8a   :  { %v131_v17 = vpop.f32.mrf.mxu0  ;;  %v141_v18 = vpop.f32.mrf.mxu1 }
  0x8b   :  { %v132_v19 = vadd.f32 %v355_v16, %v131_v17  ;;  %v142_v20 = vadd.f32 %v355_v16, %v141_v18 }
  0x8d   :  { %v171_v21 = vmax.f32 %v132_v19, 0.0  ;;  %v175_v22 = vmax.f32 %v142_v20, 0.0 }
  0x8f   :  { %v187_v23 = vpack.c.bf16 %v171_v21, %v171_v21  ;;  %v191_v24 = vpack.c.bf16 %v175_v22, %v175_v22 }
  0x91   :  { %204 = vst.msk [vmem:[%s440_s3] sm:$0xf] %vm203_vm3, %v187_v23  ;;  %v151_v25 = vpop.f32.mrf.mxu2  ;;  %v161_v26 = vpop.f32.mrf.mxu3 }
  0x92   :  { %208 = vst.msk [vmem:[%s440_s3 + $0x10] sm:$0xf] %vm203_vm3, %v191_v24  ;;  %v152_v27 = vadd.f32 %v355_v16, %v151_v25  ;;  %v162_v28 = vadd.f32 %v355_v16, %v161_v26  ;;  %v133_v29 = vpop.f32.mrf.mxu0  ;;  %v143_v30 = vpop.f32.mrf.mxu1 }
  0x93   :  { %v134_v31 = vadd.f32 %v355_v16, %v133_v29  ;;  %v144_v32 = vadd.f32 %v355_v16, %v143_v30 }
  0x94   :  { %v179_v33 = vmax.f32 %v152_v27, 0.0  ;;  %v183_v34 = vmax.f32 %v162_v28, 0.0 }
  0x95   :  { %v172_v35 = vmax.f32 %v134_v31, 0.0  ;;  %v176_v36 = vmax.f32 %v144_v32, 0.0 }
  0x96   :  { %v195_v37 = vpack.c.bf16 %v179_v33, %v179_v33  ;;  %v199_v38 = vpack.c.bf16 %v183_v34, %v183_v34 }
  0x97   :  { %v188_v39 = vpack.c.bf16 %v172_v35, %v172_v35  ;;  %v192_v40 = vpack.c.bf16 %v176_v36, %v176_v36 }
  0x98   :  { %212 = vst.msk [vmem:[%s440_s3 + $0x20] sm:$0xf] %vm203_vm3, %v195_v37 }
  0x99   :  { %216 = vst.msk [vmem:[%s440_s3 + $0x30] sm:$0xf] %vm203_vm3, %v199_v38  ;;  %v153_v41 = vpop.f32.mrf.mxu2  ;;  %v163_v42 = vpop.f32.mrf.mxu3 }
  0x9a   :  { %205 = vst.msk [vmem:[%s440_s3 + $0x4] sm:$0xf] %vm203_vm3, %v188_v39  ;;  %v154_v43 = vadd.f32 %v355_v16, %v153_v41  ;;  %v164_v44 = vadd.f32 %v355_v16, %v163_v42  ;;  %v136_v45 = vpop.f32.mrf.mxu0  ;;  %v146_v46 = vpop.f32.mrf.mxu1 }
  0x9b   :  { %209 = vst.msk [vmem:[%s440_s3 + $0x14] sm:$0xf] %vm203_vm3, %v192_v40  ;;  %v137_v47 = vadd.f32 %v355_v16, %v136_v45  ;;  %v147_v48 = vadd.f32 %v355_v16, %v146_v46 }
  0x9c   :  { %v180_v49 = vmax.f32 %v154_v43, 0.0  ;;  %v184_v50 = vmax.f32 %v164_v44, 0.0 }
  0x9d   :  { %v173_v51 = vmax.f32 %v137_v47, 0.0  ;;  %v177_v52 = vmax.f32 %v147_v48, 0.0 }
  0x9e   :  { %v196_v53 = vpack.c.bf16 %v180_v49, %v180_v49  ;;  %v200_v54 = vpack.c.bf16 %v184_v50, %v184_v50 }
  0x9f   :  { %v189_v55 = vpack.c.bf16 %v173_v51, %v173_v51  ;;  %v193_v56 = vpack.c.bf16 %v177_v52, %v177_v52 }
  0xa0   :  { %213 = vst.msk [vmem:[%s440_s3 + $0x24] sm:$0xf] %vm203_vm3, %v196_v53 }
  0xa1   :  { %217 = vst.msk [vmem:[%s440_s3 + $0x34] sm:$0xf] %vm203_vm3, %v200_v54  ;;  %v156_v57 = vpop.f32.mrf.mxu2  ;;  %v166_v58 = vpop.f32.mrf.mxu3 }
  0xa2   :  { %206 = vst.msk [vmem:[%s440_s3 + $0x8] sm:$0xf] %vm203_vm3, %v189_v55  ;;  %v157_v59 = vadd.f32 %v355_v16, %v156_v57  ;;  %v167_v60 = vadd.f32 %v355_v16, %v166_v58  ;;  %v138_v61 = vpop.f32.mrf.mxu0  ;;  %v148_v62 = vpop.f32.mrf.mxu1 }
  0xa3   :  { %210 = vst.msk [vmem:[%s440_s3 + $0x18] sm:$0xf] %vm203_vm3, %v193_v56  ;;  %v139_v63 = vadd.f32 %v355_v16, %v138_v61  ;;  %v149_v0 = vadd.f32 %v355_v16, %v148_v62 }
  0xa4   :  { %v181_v1 = vmax.f32 %v157_v59, 0.0  ;;  %v185_v2 = vmax.f32 %v167_v60, 0.0 }
  0xa5   :  { %v174_v3 = vmax.f32 %v139_v63, 0.0  ;;  %v178_v4 = vmax.f32 %v149_v0, 0.0 }
  0xa6   :  { %v197_v5 = vpack.c.bf16 %v181_v1, %v181_v1  ;;  %v201_v6 = vpack.c.bf16 %v185_v2, %v185_v2 }
  0xa7   :  { %v190_v7 = vpack.c.bf16 %v174_v3, %v174_v3  ;;  %v194_v8 = vpack.c.bf16 %v178_v4, %v178_v4 }
  0xa8   :  { %214 = vst.msk [vmem:[%s440_s3 + $0x28] sm:$0xf] %vm203_vm3, %v197_v5 }
  0xa9   :  { %218 = vst.msk [vmem:[%s440_s3 + $0x38] sm:$0xf] %vm203_vm3, %v201_v6  ;;  %v158_v9 = vpop.f32.mrf.mxu2  ;;  %v168_v10 = vpop.f32.mrf.mxu3 }
  0xaa   :  { %207 = vst.msk [vmem:[%s440_s3 + $0xc] sm:$0xf] %vm203_vm3, %v190_v7  ;;  %v159_v11 = vadd.f32 %v355_v16, %v158_v9  ;;  %v169_v12 = vadd.f32 %v355_v16, %v168_v10 }
  0xab   :  { %211 = vst.msk [vmem:[%s440_s3 + $0x1c] sm:$0xf] %vm203_vm3, %v194_v8 }
  0xac   :  { %v182_v13 = vmax.f32 %v159_v11, 0.0  ;;  %v186_v14 = vmax.f32 %v169_v12, 0.0 }
  0xae   :  { %v198_v15 = vpack.c.bf16 %v182_v13, %v182_v13  ;;  %v202_v17 = vpack.c.bf16 %v186_v14, %v186_v14 }
  0xb0   :  { %215 = vst.msk [vmem:[%s440_s3 + $0x2c] sm:$0xf] %vm203_vm3, %v198_v15 }
  0xb1   :  { %219 = vst.msk [vmem:[%s440_s3 + $0x3c] sm:$0xf] %vm203_vm3, %v202_v17 }

// kernel: modi_cdpn_forward.3
= control target key start
LH: loop header
LB: loop body
LE: loop exit
PB: predicated region body
PF: predicated region fallthrough
CT: control target
= control target key end

     0   :  { %s1528_s24 = smov 0   ;;  %s1852_s0 = inlined_call_operand.vmem [shape: bf16[2,112,32], index: 0, kind: input, shape index: {}]   ;;  %s1853_s1 = inlined_call_operand.vmem [shape: bf16[9,20,32], index: 1, kind: input, shape index: {}]   ;;  %s1854_s2 = inlined_call_operand.vmem [shape: f32[16,1], index: 2, kind: input, shape index: {}]   ;;  %s1855_s3 = inlined_call_operand.vmem [shape: f32[4,1], index: 3, kind: input, shape index: {}]   ;;  %s1856_s4 = inlined_call_operand.vmem [shape: f32[8,16], index: 4, kind: input, shape index: {}]   ;;  %s1857_s5 = inlined_call_operand.vmem [shape: f32[8,1], index: 5, kind: input, shape index: {}]   ;;  %s1858_s6 = inlined_call_operand.vmem [shape: f32[2,4,80], index: 6, kind: output, shape index: {0}]   ;;  %s1859_s7 = inlined_call_operand.vmem [shape: f32[2,8,1], index: 7, kind: output, shape index: {1}]  }
   0x1 LB: > { %s1297_s25 = sadd.s32 4294967295, %s1485_s24   ;;  %p1301_p0 = scmp.ge.s32.totalorder %s1485_s24, 1  ;;  %s1485_s24 = sphi %s1528_s24, %s18_s24  }
   0x2   : > { %p240_p1 = scmp.lt.s32.totalorder %s1485_s24, 3 }
   0x4   : > { %p241_p2 = pnand %p1301_p0, %p240_p1 }
   0x5   : > { %p275_p3 = scmp.lt.s32.totalorder (!%p241_p2), %s1297_s25, 1 }
   0x6   : > { %244 = sbr.rel (%p241_p2) target bundleno = 543 (0x21f), region = 44 }
   0xb   : > { %s1863_s25 = smov (!%p275_p3, %s1297_s25), 1  ;;  %vm388_vm0 = vcmask 261120   ;;  %vm486_vm1 = vcmask 1046528   ;;  %vm343_vm2 = vsmask.f32 7424  ;;  %vm772_vm3 = vcmask 1045504  }
   0xc   : > { %s1467_s26 = smul.u32 56, %s1863_s25  ;;  %vm660_vm4 = vsmask.f32 6400  ;;  %vm946_vm5 = vsmask.f32 5376  ;;  %vm1058_vm6 = vcmask 1044480  }
   0xd   : > { %s1303_s8 = sshll.u32 %s1863_s25, 2  ;;  %vm1119_vm13 = vcmask 650240   ;;  %vm1176_vm14 = vcmask 654336   ;;  %vm1187_vm15 = vcmask 130048   ;;  %s1304_s14 = sshll.u32 %s1863_s25, 3 }
   0xe   : > { %s1542_s29 = scalar_lea.vmem %s1852_s0, %s1467_s26  ;;  %s283_s11 = scalar_lea.vmem %s1858_s6, %s1303_s8 }
   0xf   : > { %v1437_v0 = vld [vmem:[%s1542_s29 + $0x20] sm:$0xff]  ;;  %v302_v1 = vld [vmem:[%s1542_s29 + $0x28] sm:$0x1]  ;;  %v550_v4 = vld [vmem:[%s1542_s29 + $0x2c] sm:$0x1]  ;;  %s287_s19 = scalar_lea.vmem %s1859_s7, %s1304_s14 }
  0x10   : > { %v1547_v2 = vld [vmem:[%s1542_s29 + $0x24] sm:$0xff]  ;;  %v336_v3 = vunpack.c.l.b16 %v302_v1  ;;  %v1436_v5 = vld [vmem:[%s1542_s29 + $0x18] sm:$0xff]  ;;  %v376_v6 = vshll.u32 %v1437_v0, 16  ;;  %v380_v7 = vshrl.u32 %v1437_v0, 16  ;;  %v450_v8 = vsel %vm388_vm0, %v1437_v0, 0  ;;  %v1435_v15 = vld [vmem:[%s1542_s29 + $0x10] sm:$0xff] }
  0x11   : > { %v494_v10 = vrot.slane %v1437_v0, 1  ;;  %455 = vmatpush.bf16.xpose.msra.mxu1 %v450_v8  ;;  %v584_v11 = vunpack.c.l.b16 %v550_v4  ;;  %v598_v13 = vrot.slane %v1547_v2, 1  ;;  %v368_v14 = vshll.u32 %v1436_v5, 16  ;;  %v1555_v20 = vld [vmem:[%s1542_s29 + $0x1c] sm:$0xff]  ;;  %v1564_v34 = vld [vmem:[%s1542_s29 + $0x8] sm:$0xff]  ;;  %v1569_v37 = vld [vmem:[%s1542_s29 + $0x14] sm:$0xff] }
  0x12   : > { %v342_v9 = vpack.c.b16 %v336_v3, %v336_v3  ;;  %v378_v12 = vrot.slane %v376_v6, 1  ;;  %v372_v19 = vshrl.u32 %v1436_v5, 16  ;;  %v492_v26 = vrot.slane %v1436_v5, 1  ;;  %v1579_v48 = vld [vmem:[%s1542_s29 + $0xc] sm:$0xff]  ;;  %v1459_v53 = vld [vmem:[%s1542_s29] sm:$0xf0] }
  0x13   : > { %v590_v18 = vpack.c.b16 %v584_v11, %v584_v11  ;;  %v370_v22 = vrot.slane %v368_v14, 1  ;;  %v448_v28 = vsel %vm388_vm0, %v1436_v5, 0  ;;  %v360_v29 = vshll.u32 %v1435_v15, 16  ;;  %v1460_v54 = vld [vmem:[%s1542_s29] sm:$0xe] }
  0x14   : > { %v496_v16 = vrot.slane %v342_v9, 1  ;;  %v384_v17 = vshll.u32 %v342_v9, 16  ;;  %v382_v21 = vor.u32 %v380_v7, %v378_v12  ;;  %v596_v33 = vrot.slane %v1555_v20, 1  ;;  %v644_v58 = vld [vmem:[%s1542_s29 + $0x2c] sm:$0x3]  ;;  %v1456_v1 = vld [vmem:[%s1542_s29] sm:$0xff]  }
  0x15   : > { %v600_v25 = vrot.slane %v590_v18, 1  ;;  %v374_v32 = vor.u32 %v372_v19, %v370_v22  ;;  %v495_v38 = vsel %vm486_vm1, %v492_v26, %v494_v10  ;;  %v490_v39 = vrot.slane %v1435_v15, 1  ;;  %v836_v61 = vld [vmem:[%s1542_s29 + $0x30] sm:$0x3]  ;;  %v540_v3 = vld [vmem:[%s1542_s29 + $0x4] sm:$0xe] }
  0x16   : > { %v497_v23 = vsel %vm486_vm1, %v494_v10, %v496_v16  ;;  %v386_v24 = vrot.slane %v384_v17, 1  ;;  %v362_v40 = vrot.slane %v360_v29, 1  ;;  %v364_v41 = vshrl.u32 %v1435_v15, 16  ;;  %v930_v62 = vld [vmem:[%s1542_s29 + $0x30] sm:$0x7]  ;;  %v1605_v7 = vld [vmem:[%s1542_s29 + $0x8] sm:$0xff]  }
  0x17   : > { %v517_v27 = vsel %vm388_vm0, %v497_v23, 0  ;;  %v601_v31 = vsel %vm486_vm1, %v598_v13, %v600_v25  ;;  %v379_v42 = vsel %vm343_vm2, %v374_v32, %v378_v12  ;;  %v599_v43 = vsel %vm486_vm1, %v596_v33, %v598_v13  ;;  %v1611_v12 = vld [vmem:[%s1542_s29 + $0x28] sm:$0xff] }
  0x18   : > { %522 = vmatpush.bf16.xpose.msra.mxu2 %v517_v27  ;;  %v387_v30 = vsel %vm343_vm2, %v382_v21, %v386_v24  ;;  %v621_v36 = vsel %vm388_vm0, %v601_v31, 0  ;;  %v352_v44 = vshll.u32 %v1564_v34, 16  ;;  %v514_v45 = vsel %vm388_vm0, %v495_v38, 0 }
  0x19   : > { %v408_v35 = vsel %vm388_vm0, %v387_v30, 0  ;;  %626 = vmatpush.bf16.xpose.msra.mxu3 %v621_v36  ;;  %456 = vmatpush.bf16.xpose.msra.mxu1 %v448_v28  ;;  %v594_v46 = vrot.slane %v1569_v37, 1  ;;  %v488_v47 = vrot.slane %v1564_v34, 1  ;;  %v405_v49 = vsel %vm388_vm0, %v379_v42, 0 }
  0x1a   : > { %413 = vmatpush.bf16.xpose.msra.mxu0 %v408_v35  ;;  %v618_v50 = vsel %vm388_vm0, %v599_v43, 0  ;;  %v493_v51 = vsel %vm486_vm1, %v490_v39, %v492_v26  ;;  %v366_v52 = vor.u32 %v364_v41, %v362_v40  ;;  %v446_v55 = vsel %vm388_vm0, %v1435_v15, 0 }
  0x1b   : > { %v1587_v56 = vrot.slane %v352_v44, 1  ;;  %v356_v57 = vshrl.u32 %v1564_v34, 16  ;;  %v597_v59 = vsel %vm486_vm1, %v594_v46, %v596_v33  ;;  %v491_v60 = vsel %vm486_vm1, %v488_v47, %v490_v39 }
  0x1c   : > { %v511_v63 = vsel %vm388_vm0, %v493_v51, 0  ;;  %v444_v0 = vsel %vm388_vm0, %v1564_v34, 0  ;;  %v371_v4 = vsel %vm343_vm2, %v366_v52, %v370_v22  ;;  %v592_v5 = vrot.slane %v1579_v48, 1 }
  0x1d   : > { %v1461_v6 = vor.u32 %v1460_v54, %v1459_v53  ;;  %v658_v8 = vunpack.c.l.b16 %v644_v58  ;;  %v615_v9 = vsel %vm388_vm0, %v597_v59, 0  ;;  %v508_v10 = vsel %vm388_vm0, %v491_v60, 0 }
  0x1e   : > { %v358_v11 = vor.u32 %v356_v57, %v1587_v56  ;;  %v944_v13 = vunpack.c.l.b16 %v930_v62  ;;  %v870_v14 = vunpack.c.l.b16 %v836_v61  ;;  %v347_v15 = vshll.u32 %v1456_v1, 16 }
  0x1f   : > { %v574_v16 = vunpack.c.l.b16 %v540_v3  ;;  %v659_v17 = vpack.c.b16 %v658_v8, %v658_v8  ;;  %v575_v18 = vunpack.c.l.b16 %v1605_v7  ;;  %v697_v19 = vshrl.u32 %v1547_v2, 16 }
  0x20   : > { %523 = vmatpush.bf16.xpose.msra.mxu2 %v514_v45  ;;  %v700_v21 = vshll.u32 %v1547_v2, 16  ;;  %v1616_v22 = vpack.c.b16 %v944_v13, %v944_v13  ;;  %v402_v23 = vsel %vm388_vm0, %v371_v4, 0  ;;  %v595_v24 = vsel %vm486_vm1, %v592_v5, %v594_v46 }
  0x21   : > { %627 = vmatpush.bf16.xpose.msra.mxu3 %v618_v50  ;;  %457 = vmatpush.bf16.xpose.msra.mxu1 %v446_v55  ;;  %v487_v25 = vrot.slane %v1461_v6, 1  ;;  %v706_v26 = vshrl.u32 %v659_v17, 16  ;;  %v345_v27 = vshrl.u32 %v1456_v1, 16  ;;  %v709_v28 = vshll.u32 %v659_v17, 16  ;;  %v1639_v55 = vld [vmem:[%s1542_s29 + $0x20] sm:$0xff] }
  0x22   : > { %414 = vmatpush.bf16.xpose.msra.mxu0 %v405_v49  ;;  %v983_v29 = vshrl.u32 %v1611_v12, 16  ;;  %v986_v30 = vshll.u32 %v1611_v12, 16  ;;  %v363_v31 = vsel %vm343_vm2, %v358_v11, %v362_v40  ;;  %v876_v32 = vpack.c.b16 %v870_v14, %v870_v14 }
  0x23   : > { %v992_v33 = vshrl.u32 %v1616_v22, 16  ;;  %v995_v35 = vshll.u32 %v1616_v22, 16  ;;  %v349_v36 = vrot.slane %v347_v15, 1  ;;  %v1629_v38 = vpack.c.b16 %v575_v18, %v574_v16  ;;  %v1660_v15 = vld [vmem:[%s1542_s29 + $0x18] sm:$0xff] }
  0x24   : > { %v699_v39 = vrot.slane %v697_v19, 1  ;;  %v702_v41 = vrot.slane %v700_v21, 2  ;;  %v708_v42 = vrot.slane %v706_v26, 1  ;;  %v711_v43 = vrot.slane %v709_v28, 2 }
  0x25   : > { %v780_v40 = vrot.slane %v1547_v2, 2  ;;  %v782_v44 = vrot.slane %v659_v17, 2  ;;  %v985_v45 = vrot.slane %v983_v29, 2  ;;  %v988_v46 = vrot.slane %v986_v30, 3 }
  0x26   : > { %v994_v49 = vrot.slane %v992_v33, 2  ;;  %v997_v50 = vrot.slane %v995_v35, 3  ;;  %v612_v51 = vsel %vm388_vm0, %v595_v24, 0  ;;  %v489_v52 = vsel %vm486_vm1, %v487_v25, %v488_v47 }
  0x27   : > { %v884_v53 = vrot.slane %v1611_v12, 2  ;;  %v442_v54 = vsel %vm388_vm0, %v1456_v1, 0  ;;  %v399_v57 = vsel %vm388_vm0, %v363_v31, 0  ;;  %v886_v2 = vrot.slane %v876_v32, 2 }
  0x28   : > { %524 = vmatpush.bf16.xpose.msra.mxu2 %v511_v63  ;;  %v783_v58 = vsel %vm772_vm3, %v780_v40, %v782_v44  ;;  %v350_v59 = vor.u32 %v349_v36, %v345_v27  ;;  %v591_v60 = vrot.slane %v1629_v38, 1  ;;  %v703_v61 = vor.u32 %v702_v41, %v699_v39  ;;  %v1438_v27 = vld [vmem:[%s1853_s1] sm:$0xff]  ;;  %v1440_v36 = vld [vmem:[%s1853_s1 + $0x18] sm:$0xff] }
  0x29   : > { %628 = vmatpush.bf16.xpose.msra.mxu3 %v615_v9  ;;  %458 = vmatpush.bf16.xpose.msra.mxu1 %v444_v0  ;;  %v712_v34 = vor.u32 %v711_v43, %v708_v42  ;;  %v989_v47 = vor.u32 %v988_v46, %v985_v45  ;;  %v998_v62 = vor.u32 %v997_v50, %v994_v49  ;;  %v688_v63 = vshrl.u32 %v1555_v20, 16  ;;  %v1439_v45 = vld [vmem:[%s1853_s1 + $0xc] sm:$0xff]  ;;  %v1445_v46 = vld [vmem:[%s1853_s1 + $0x24] sm:$0xff] }
  0x2a   : > { %415 = vmatpush.bf16.xpose.msra.mxu0 %v402_v23  ;;  %v803_v0 = vsel %vm388_vm0, %v783_v58, 0  ;;  %v691_v1 = vshll.u32 %v1555_v20, 16  ;;  %v974_v3 = vshrl.u32 %v1639_v55, 16  ;;  %v977_v4 = vshll.u32 %v1639_v55, 16  ;;  %v1692_v50 = vld [vmem:[%s1542_s29 + $0x10] sm:$0xff] }
  0x2b   : > { %v887_v6 = vsel %vm772_vm3, %v884_v53, %v886_v2  ;;  %v355_v8 = vsel %vm343_vm2, %v350_v59, %v1587_v56  ;;  %v593_v9 = vsel %vm486_vm1, %v591_v60, %v592_v5  ;;  %v505_v11 = vsel %vm388_vm0, %v489_v52, 0  ;;  %v756_v60 = vld [vmem:[%s1542_s29 + $0x4] sm:$0xc] }
  0x2c   : > { %v713_v13 = vsel %vm660_vm4, %v703_v61, %v712_v34  ;;  %v999_v14 = vsel %vm946_vm5, %v989_v47, %v998_v62  ;;  %v690_v16 = vrot.slane %v688_v63, 1  ;;  %v693_v17 = vrot.slane %v691_v1, 2 }
  0x2d   : > { %v976_v19 = vrot.slane %v974_v3, 2  ;;  %v979_v56 = vrot.slane %v977_v4, 3  ;;  %v907_v21 = vsel %vm388_vm0, %v887_v6, 0  ;;  %v396_v23 = vsel %vm388_vm0, %v355_v8, 0  ;;  %v1338_v6 = vld [vmem:[%s1853_s1 + $0x20] sm:$0x3] }
  0x2e   : > { %v609_v5 = vsel %vm388_vm0, %v593_v9, 0  ;;  %v1019_v24 = vsel %vm388_vm0, %v999_v14, 0  ;;  %v882_v25 = vrot.slane %v1639_v55, 2  ;;  %v679_v28 = vshrl.u32 %v1569_v37, 16  ;;  %v1347_v14 = vld [vmem:[%s1853_s1 + $0x2c] sm:$0x3] }
  0x2f   : > { %v682_v29 = vshll.u32 %v1569_v37, 16  ;;  %v965_v30 = vshrl.u32 %v1660_v15, 16  ;;  %v968_v31 = vshll.u32 %v1660_v15, 16  ;;  %v694_v32 = vor.u32 %v693_v17, %v690_v16 }
  0x30   : > { %525 = vmatpush.bf16.xpose.msra.mxu2 %v508_v10  ;;  %v778_v10 = vrot.slane %v1555_v20, 2  ;;  %v733_v20 = vsel %vm388_vm0, %v713_v13, 0  ;;  %v980_v33 = vor.u32 %v979_v56, %v976_v19  ;;  %v885_v39 = vsel %vm772_vm3, %v882_v25, %v884_v53  ;;  %v1307_v13 = vld [vmem:[%s1853_s1 + $0x14] sm:$0x3] }
  0x31   : > { %629 = vmatpush.bf16.xpose.msra.mxu3 %v612_v51  ;;  %459 = vmatpush.bf16.xpose.msra.mxu1 %v442_v54  ;;  %v776_v41 = vrot.slane %v1569_v37, 2  ;;  %v681_v42 = vrot.slane %v679_v28, 1  ;;  %v684_v43 = vrot.slane %v682_v29, 2  ;;  %v970_v44 = vrot.slane %v968_v31, 3  ;;  %v826_v54 = vld [vmem:[%s1542_s29 + $0x8] sm:$0xc] }
  0x32   : > { %416 = vmatpush.bf16.xpose.msra.mxu0 %v399_v57  ;;  %v781_v26 = vsel %vm772_vm3, %v778_v10, %v780_v40  ;;  %v967_v40 = vrot.slane %v965_v30, 2  ;;  %v704_v49 = vsel %vm660_vm4, %v694_v32, %v703_v61  ;;  %v990_v37 = vsel %vm946_vm5, %v980_v33, %v989_v47  ;;  %v301_v61 = vld [vmem:[%s1853_s1 + $0x8] sm:$0x3] }
  0x33   : > { %v800_v35 = vsel %vm388_vm0, %v781_v26, 0  ;;  %v904_v51 = vsel %vm388_vm0, %v885_v39, 0  ;;  %v880_v52 = vrot.slane %v1660_v15, 2  ;;  %v779_v53 = vsel %vm772_vm3, %v776_v41, %v778_v10 }
  0x34   : > { %v730_v57 = vsel %vm388_vm0, %v704_v49, 0  ;;  %v1016_v2 = vsel %vm388_vm0, %v990_v37, 0  ;;  %v685_v58 = vor.u32 %v684_v43, %v681_v42  ;;  %v971_v59 = vor.u32 %v970_v44, %v967_v40 }
  0x35   : > { %v670_v34 = vshrl.u32 %v1579_v48, 16  ;;  %v673_v47 = vshll.u32 %v1579_v48, 16  ;;  %v956_v62 = vshrl.u32 %v1692_v50, 16  ;;  %v959_v63 = vshll.u32 %v1692_v50, 16 }
  0x36   : > { %v860_v1 = vunpack.c.l.b16 %v826_v54  ;;  %v861_v3 = vunpack.c.h.b16 %v1605_v7  ;;  %v883_v4 = vsel %vm772_vm3, %v880_v52, %v882_v25  ;;  %v774_v8 = vrot.slane %v1579_v48, 2  ;;  %v1424_v7 = vld [vmem:[%s1853_s1 + $0x68] sm:$0x3] }
  0x37   : > { %v770_v9 = vunpack.c.l.b16 %v756_v60  ;;  %v695_v10 = vsel %vm660_vm4, %v685_v58, %v694_v32  ;;  %v433_v16 = vunpack.c.l.b16 %v301_v61  ;;  %v672_v17 = vrot.slane %v670_v34, 1 }
  0x38   : > { %526 = vmatpush.bf16.xpose.msra.mxu2 %v505_v11  ;;  %1334 = vmatmul.msk.bf16.vlgmr.msra.gmra.mxu1 %vm388_vm0, %v1438_v27  ;;  %v981_v11 = vsel %vm946_vm5, %v971_v59, %v980_v33  ;;  %v675_v19 = vrot.slane %v673_v47, 2  ;;  %v958_v56 = vrot.slane %v956_v62, 2  ;;  %v901_v48 = vsel %vm388_vm0, %v883_v4, 0 }
  0x39   : > { %808 = vmatpush.bf16.xpose.msrb.mxu1 %v803_v0  ;;  %630 = vmatpush.bf16.xpose.msra.mxu3 %v609_v5  ;;  %v797_v0 = vsel %vm388_vm0, %v779_v53, 0  ;;  %v871_v5 = vpack.c.b16 %v861_v3, %v860_v1  ;;  %v777_v25 = vsel %vm772_vm3, %v774_v8, %v776_v41  ;;  %v771_v26 = vpack.c.b16 %v575_v18, %v770_v9  ;;  %v1452_v9 = vld [vmem:[%s1853_s1 + $0x48] sm:$0xff] }
  0x3a   : > { %417 = vmatpush.bf16.xpose.msra.mxu0 %v396_v23  ;;  %v480_v23 = vunpack.c.l.b16 %v1338_v6  ;;  %v727_v27 = vsel %vm388_vm0, %v695_v10, 0  ;;  %v1013_v28 = vsel %vm388_vm0, %v981_v11, 0  ;;  %v878_v29 = vrot.slane %v1692_v50, 2  ;;  %v1453_v11 = vld [vmem:[%s1853_s1 + $0x54] sm:$0xff] }
  0x3b   : > { %v435_v30 = vpack.c.b16 %v433_v16, %v433_v16  ;;  %v676_v31 = vor.u32 %v675_v19, %v672_v17  ;;  %v662_v33 = vshrl.u32 %v1629_v38, 16  ;;  %v948_v39 = vshrl.u32 %v871_v5, 16  ;;  %v1381_v16 = vld [vmem:[%s1853_s1 + $0x44] sm:$0x3]  ;;  %v1122_v17 = vld [vmem:[%s1854_s2 + $0x8] sm:$0xff] }
  0x3c   : > { %v951_v41 = vshll.u32 %v871_v5, 16  ;;  %v482_v18 = vpack.c.b16 %v480_v23, %v480_v23  ;;  %v773_v42 = vrot.slane %v771_v26, 2  ;;  %v881_v44 = vsel %vm772_vm3, %v878_v29, %v880_v52  ;;  %v1112_v19 = vld [vmem:[%s1855_s3] sm:$0xf]  ;;  %v1042_v23 = vld [vmem:[%s1542_s29 + $0x8] sm:$0x8] }
  0x3d   : > { %v950_v37 = vrot.slane %v948_v39, 2  ;;  %v898_v53 = vsel %vm388_vm0, %v881_v44, 0  ;;  %v1064_v6 = vrot.slane %v1639_v55, 3  ;;  %v1446_v55 = vld [vmem:[%s1853_s1 + $0x30] sm:$0xff]  ;;  %v1060_v26 = vrot.slane %v1692_v50, 3 }
  0x3e   : > { %v775_v54 = vsel %vm772_vm3, %v773_v42, %v774_v8  ;;  %v1447_v8 = vld [vmem:[%s1853_s1 + $0x3c] sm:$0xff]  ;;  %v1052_v42 = vunpack.c.l.b16 %v1424_v7 }
  0x3f   : > { %1343 = vmatmul.msk.bf16.vlgmr.msra.gmra.mxu2 %vm388_vm0, %v1440_v36  ;;  %v794_v36 = vsel %vm388_vm0, %v777_v25, 0  ;;  %v791_v34 = vsel %vm388_vm0, %v775_v54, 0 }
  0x40   : > { %912 = vmatpush.bf16.xpose.msrb.mxu2 %v907_v21  ;;  %1368 = vmatmul.msk.bf16.vlgmr.msra.gmra.mxu3 %vm388_vm0, %v1445_v46  ;;  %v961_v21 = vrot.slane %v959_v63, 3 }
  0x41   : > { %1024 = vmatpush.bf16.xpose.msrb.mxu3 %v1019_v24  ;;  %809 = vmatpush.bf16.xpose.msrb.mxu1 %v800_v35  ;;  %v560_v24 = vunpack.c.l.b16 %v1347_v14  ;;  %v665_v35 = vshll.u32 %v1629_v38, 16  ;;  %v664_v38 = vrot.slane %v662_v33, 1  ;;  %v1062_v14 = vrot.slane %v1660_v15, 3 }
  0x42   : > { %738 = vmatpush.bf16.xpose.msrb.mxu0 %v733_v20  ;;  %v312_v20 = vunpack.c.l.b16 %v1307_v13  ;;  %v962_v32 = vor.u32 %v961_v21, %v958_v56  ;;  %v1487_v56 = vmov 0   ;;  %v766_v21 = vunpack.c.l.b16 %v1381_v16 }
  0x43   : > { %1328 = vmatmul.msk.bf16.vlgmr.msra.gmra.mxu0 %vm388_vm0, %v1439_v45  ;;  %v562_v40 = vpack.c.b16 %v560_v24, %v560_v24  ;;  %v686_v45 = vsel %vm660_vm4, %v676_v31, %v685_v58  ;;  %v667_v49 = vrot.slane %v665_v35, 2  ;;  %v1066_v58 = vrot.slane %v1611_v12, 3  ;;  %1477 = vset.pattern.permute.xlu0 %v1487_v56  ;;  %v1415_v24 = vld [vmem:[%s1853_s1 + $0x5c] sm:$0x3] }
  0x44   : > { %v314_v43 = vpack.c.b16 %v312_v20, %v312_v20  ;;  %v972_v46 = vsel %vm946_vm5, %v962_v32, %v971_v59  ;;  %v1068_v59 = vrot.slane %v1616_v22, 3  ;;  %v1065_v15 = vsel %vm1058_vm6, %v1062_v14, %v1064_v6  ;;  %1130 = vperm.xlu0 %1477, %v1122_v17   ;;  %1478 = vset.pattern.permute.xlu2 %v1487_v56 }
  0x45   : > { %v1010_v52 = vsel %vm388_vm0, %v972_v46, 0  ;;  %v668_v60 = vor.u32 %v667_v49, %v664_v38  ;;  %v1067_v10 = vsel %vm1058_vm6, %v1064_v6, %v1066_v58  ;;  %1115 = vperm.xlu2 %1478, %v1112_v19   ;;  %v1083_v20 = vsel %vm388_vm0, %v1065_v15, 0 }
  0x46   : > { %v1069_v62 = vsel %vm1058_vm6, %v1066_v58, %v1068_v59  ;;  %v1086_v13 = vsel %vm388_vm0, %v1067_v10, 0  ;;  %v1063_v33 = vsel %vm1058_vm6, %v1060_v26, %v1062_v14 }
  0x47   : > { %v677_v63 = vsel %vm660_vm4, %v668_v60, %v676_v31  ;;  %v1089_v22 = vsel %vm388_vm0, %v1069_v62, 0  ;;  %v940_v31 = vunpack.c.l.b16 %v1415_v24  ;;  %v1080_v39 = vsel %vm388_vm0, %v1063_v33, 0 }
  0x48   : > { %913 = vmatpush.bf16.xpose.msrb.mxu2 %v904_v51  ;;  %1335 = vmatmul.msk.bf16.gmra.mxu1 %vm388_vm0, %v435_v30  ;;  %v953_v51 = vrot.slane %v951_v41, 3  ;;  %v721_v1 = vsel %vm388_vm0, %v677_v63, 0  ;;  %v1121_v30 = vld [vmem:[%s1854_s2] sm:$0xff] }
  0x49   : > { %1025 = vmatpush.bf16.xpose.msrb.mxu3 %v1016_v2  ;;  %810 = vmatpush.bf16.xpose.msrb.mxu1 %v797_v0  ;;  %v877_v2 = vrot.slane %v871_v5, 2  ;;  %v1372_v5 = vld [vmem:[%s1853_s1 + $0x38] sm:$0x3] }
  0x4a   : > { %739 = vmatpush.bf16.xpose.msrb.mxu0 %v730_v57  ;;  %v724_v57 = vsel %vm388_vm0, %v686_v45, 0  ;;  %v954_v61 = vor.u32 %v953_v51, %v950_v37 }
  0x4b   : > { %v879_v47 = vsel %vm772_vm3, %v877_v2, %v878_v29  ;;  %v654_v29 = vunpack.c.l.b16 %v1372_v5 }
  0x4c   : > { %v963_v0 = vsel %vm946_vm5, %v954_v61, %v962_v32  ;;  %v895_v12 = vsel %vm388_vm0, %v879_v47, 0  ;;  %1125 = vperm.xlu0 %1477, %v1121_v30  }
  0x4d   : > { %v1007_v4 = vsel %vm388_vm0, %v963_v0, 0  ;;  %v656_v50 = vpack.c.b16 %v654_v29, %v654_v29 }
  0x4f   : > { %1344 = vmatmul.msk.bf16.gmra.mxu2 %vm388_vm0, %v482_v18 }
  0x50   : > { %914 = vmatpush.bf16.xpose.msrb.mxu2 %v901_v48  ;;  %1369 = vmatmul.msk.bf16.gmra.mxu3 %vm388_vm0, %v562_v40  ;;  %v1390_v48 = vld [vmem:[%s1853_s1 + $0x50] sm:$0x3]  ;;  %v1454_v40 = vld [vmem:[%s1853_s1 + $0x60] sm:$0xff] }
  0x51   : > { %1026 = vmatpush.bf16.xpose.msrb.mxu3 %v1013_v28  ;;  %811 = vmatpush.bf16.xpose.msrb.mxu1 %v794_v36  ;;  %v846_v25 = vunpack.c.l.b16 %v1390_v48  ;;  %v1056_v28 = vunpack.c.l.b16 %v1042_v23  ;;  %v942_v36 = vpack.c.b16 %v940_v31, %v940_v31 }
  0x52   : > { %740 = vmatpush.bf16.xpose.msrb.mxu0 %v727_v27  ;;  %v768_v27 = vpack.c.b16 %v766_v21, %v766_v21 }
  0x53   : > { %1329 = vmatmul.msk.bf16.gmra.mxu0 %vm388_vm0, %v314_v43  ;;  %v848_v32 = vpack.c.b16 %v846_v25, %v846_v25  ;;  %v1057_v35 = vpack.c.b16 %v861_v3, %v1056_v28  ;;  %v1054_v43 = vpack.c.b16 %v1052_v42, %v1052_v42 }
  0x55   : > { %v1059_v41 = vrot.slane %v1057_v35, 3 }
  0x57   : > { %v1061_v18 = vsel %vm1058_vm6, %v1059_v41, %v1060_v26 }
  0x58   : > { %915 = vmatpush.bf16.xpose.msrb.mxu2 %v898_v53  ;;  %v1077_v3 = vsel %vm388_vm0, %v1061_v18, 0  ;;  %v1137_v53 = vlaneseq }
  0x59   : > { %1027 = vmatpush.bf16.xpose.msrb.mxu3 %v1010_v52  ;;  %812 = vmatpush.bf16.xpose.msrb.mxu1 %v791_v34 }
  0x5a   : > { %741 = vmatpush.bf16.xpose.msrb.mxu0 %v724_v57  ;;  %v1138_v52 = vand.u32 127, %v1137_v53 }
  0x5c   : > { %v1142_v60 = vand.u32 65535, %v1138_v52  ;;  %v1143_v34 = vshrl.u32 %v1138_v52, 16 }
  0x5e   : > { %v1146_v47 = vmul.u32 52428, %v1142_v60 }
  0x60   : > { %916 = vmatpush.bf16.xpose.msrb.mxu2 %v895_v12  ;;  %1386 = vmatmul.msk.bf16.vlgmr.msrb.gmra.mxu1 %vm388_vm0, %v1447_v8  ;;  %v1145_v12 = vmul.u32 52429, %v1142_v60  ;;  %v1150_v15 = vshrl.u32 %v1146_v47, 16 }
  0x61   : > { %1028 = vmatpush.bf16.xpose.msrb.mxu3 %v1007_v4 }
  0x62   : > { %742 = vmatpush.bf16.xpose.msrb.mxu0 %v721_v1  ;;  %v1149_v1 = vshll.u32 %v1146_v47, 16 }
  0x64   : > { %vm1153_vm7 = vc.u32 %v1145_v12, %v1149_v1  ;;  %v1155_v8 = vadd.s32 %v1149_v1, %v1145_v12 }
  0x67   : > { %1411 = vmatmul.msk.bf16.vlgmr.msrb.gmra.mxu2 %vm388_vm0, %v1452_v9 }
  0x68   : > { %1462 = vmatpush.bf16.xpose.msra.mxu2 %v1089_v22  ;;  %1420 = vmatmul.msk.bf16.vlgmr.msrb.gmra.mxu3 %vm388_vm0, %v1453_v11  ;;  %v1154_v11 = vsel %vm1153_vm7, 1, %v1487_v56 }
  0x69   : > { %1377 = vmatmul.msk.bf16.vlgmr.msrb.gmra.mxu0 %vm388_vm0, %v1446_v55  ;;  %v1148_v55 = vmul.u32 52428, %v1143_v34 }
  0x6a   : > { %1094 = vmatpush.bf16.xpose.msra.mxu0 %v1089_v22  ;;  %v1147_v22 = vmul.u32 52429, %v1143_v34 }
  0x6b   : > { %v1156_v14 = vadd.s32 %v1154_v11, %v1148_v55 }
  0x6c   : > { %v1151_v6 = vshll.u32 %v1147_v22, 16  ;;  %v1152_v5 = vshrl.u32 %v1147_v22, 16 }
  0x6e   : > { %vm1157_vm8 = vc.u32 %v1155_v8, %v1151_v6 }
  0x6f   : > { %v1158_v17 = vsel %vm1157_vm8, 1, %v1487_v56 }
  0x70   : > { %1463 = vmatpush.bf16.xpose.msra.mxu2 %v1086_v13  ;;  %1387 = vmatmul.msk.bf16.gmra.mxu1 %vm388_vm0, %v768_v27  ;;  %v1160_v21 = vadd.s32 %v1158_v17, %v1156_v14 }
  0x72   : > { %1095 = vmatpush.bf16.xpose.msra.mxu0 %v1086_v13 }
  0x77   : > { %1412 = vmatmul.msk.bf16.gmra.mxu2 %vm388_vm0, %v848_v32 }
  0x78   : > { %1464 = vmatpush.bf16.xpose.msra.mxu2 %v1083_v20  ;;  %1421 = vmatmul.msk.bf16.gmra.mxu3 %vm388_vm0, %v942_v36 }
  0x79   : > { %1378 = vmatmul.msk.bf16.gmra.mxu0 %vm388_vm0, %v656_v50 }
  0x7a   : > { %1096 = vmatpush.bf16.xpose.msra.mxu0 %v1083_v20  ;;  %v1161_v20 = vadd.s32 %v1160_v21, %v1150_v15  ;;  %v1185_v21 = vld [vmem:[%s1856_s4] sm:$0xff] }
  0x7c   : > { %v1162_v26 = vadd.s32 %v1161_v20, %v1152_v5 }
  0x7e   : > { %v1163_v31 = vshrl.u32 %v1162_v26, 3 }
  0x80   : > { %1465 = vmatpush.bf16.xpose.msra.mxu2 %v1080_v39  ;;  %v1164_v56 = vmul.u32 10, %v1163_v31 }
  0x82   : > { %1097 = vmatpush.bf16.xpose.msra.mxu0 %v1080_v39 }
  0x88   : > { %1466 = vmatpush.bf16.xpose.msra.mxu2 %v1077_v3 }
  0x8a   : > { %1098 = vmatpush.bf16.xpose.msra.mxu0 %v1077_v3 }
  0x8f   : > { %1430 = vmatmul.msk.bf16.vlgmr.msra.gmra.mxu2 %vm388_vm0, %v1054_v43  ;;  %v1165_v43 = vsub.s32 %v1138_v52, %v1164_v56 }
  0x91   : > { %1429 = vmatmul.msk.bf16.vlgmr.msra.gmra.mxu0 %vm388_vm0, %v1454_v40  ;;  %vm1168_vm9 = vcmp.ne.s32.totalorder %v1165_v43, 0  ;;  %vm1169_vm10 = vcmp.lt.s32.totalorder %v1165_v43, 0  ;;  %vm1211_vm0 = vcmask 7168  }
  0x92   : > { %vm1170_vm11 = vmand %vm1169_vm10, %vm1168_vm9 }
  0xb5   : > { %v461_v44 = vpop.f32.mrf.mxu1 }
  0xb6   : > { %v1131_v7 = vpop.permute.xlu0 %1130 }
  0xbd   : > { %v463_v38 = vpop.f32.mrf.mxu1 }
  0xc0   : > { %v419_v45 = vpop.f32.mrf.mxu0 }
  0xc1   : > { %v462_v46 = vadd.f32 %v461_v44, %v419_v45 }
  0xc2   : > { %v528_v49 = vpop.f32.mrf.mxu2 }
  0xc3   : > { %v537_v37 = vadd.f32 %v528_v49, %v462_v46  ;;  %v632_v51 = vpop.f32.mrf.mxu3 }
  0xc5   : > { %v641_v54 = vadd.f32 %v632_v51, %v537_v37  ;;  %v466_v2 = vpop.f32.mrf.mxu1 }
  0xc8   : > { %v421_v57 = vpop.f32.mrf.mxu0 }
  0xc9   : > { %v464_v35 = vadd.f32 %v463_v38, %v421_v57  ;;  %v1171_v38 = vadd.s32 10, %v1165_v43 }
  0xca   : > { %v530_v58 = vpop.f32.mrf.mxu2 }
  0xcb   : > { %v634_v59 = vpop.f32.mrf.mxu3  ;;  %v538_v39 = vadd.f32 %v530_v58, %v464_v35  ;;  %v1126_v58 = vpop.permute.xlu0 %1125 }
  0xcd   : > { %v468_v62 = vpop.f32.mrf.mxu1  ;;  %v642_v44 = vadd.f32 %v634_v59, %v538_v39 }
  0xd0   : > { %v424_v61 = vpop.f32.mrf.mxu0 }
  0xd1   : > { %v467_v28 = vadd.f32 %v466_v2, %v424_v61  ;;  %v1172_v61 = vsel %vm1170_vm11, %v1171_v38, %v1165_v43 }
  0xd2   : > { %v533_v63 = vpop.f32.mrf.mxu2  ;;  %vm1828_vm12 = vcmp.lt.s32.totalorder %v1172_v61, 8 }
  0xd3   : > { %v637_v0 = vpop.f32.mrf.mxu3  ;;  %v539_v32 = vadd.f32 %v533_v63, %v467_v28 }
  0xd5   : > { %v643_v41 = vadd.f32 %v637_v0, %v539_v32  ;;  %v1116_v0 = vpop.permute.xlu2 %1115 }
  0xd8   : > { %v426_v4 = vpop.f32.mrf.mxu0 }
  0xda   : > { %v535_v9 = vpop.f32.mrf.mxu2 }
  0xdb   : > { %v639_v13 = vpop.f32.mrf.mxu3 }
  0xdd   : > { %v814_v10 = vpop.f32.mrf.mxu1 }
  0xe5   : > { %v816_v19 = vpop.f32.mrf.mxu1 }
  0xe6   : > { %v744_v16 = vpop.f32.mrf.mxu0 }
  0xe7   : > { %v753_v50 = vadd.f32 %v744_v16, %v641_v54 }
  0xe9   : > { %v823_v3 = vadd.f32 %v814_v10, %v753_v50 }
  0xea   : > { %v918_v48 = vpop.f32.mrf.mxu2 }
  0xeb   : > { %v1030_v23 = vpop.f32.mrf.mxu3  ;;  %v927_v45 = vadd.f32 %v918_v48, %v823_v3  ;;  %v1186_v48 = vld [vmem:[%s1857_s5] sm:$0xff] }
  0xed   : > { %v819_v25 = vpop.f32.mrf.mxu1  ;;  %v1039_v53 = vadd.f32 %v1030_v23, %v927_v45 }
  0xee   : > { %v746_v24 = vpop.f32.mrf.mxu0 }
  0xef   : > { %v754_v46 = vadd.f32 %v746_v24, %v642_v44 }
  0xf1   : > { %v824_v54 = vadd.f32 %v816_v19, %v754_v46 }
  0xf2   : > { %v920_v27 = vpop.f32.mrf.mxu2 }
  0xf3   : > { %v1032_v29 = vpop.f32.mrf.mxu3  ;;  %v928_v52 = vadd.f32 %v920_v27, %v824_v54 }
  0xf5   : > { %v821_v33 = vpop.f32.mrf.mxu1  ;;  %v1040_v22 = vadd.f32 %v1032_v29, %v928_v52 }
  0xf6   : > { %v749_v30 = vpop.f32.mrf.mxu0 }
  0xf7   : > { %v755_v40 = vadd.f32 %v749_v30, %v643_v41 }
  0xf9   : > { %v825_v49 = vadd.f32 %v819_v25, %v755_v40 }
  0xfa   : > { %v923_v36 = vpop.f32.mrf.mxu2 }
  0xfb   : > { %v1035_v18 = vpop.f32.mrf.mxu3  ;;  %v929_v57 = vadd.f32 %v923_v36, %v825_v49 }
  0xfd   : > { %v1041_v59 = vadd.f32 %v1035_v18, %v929_v57 }
  0xfe   : > { %v751_v42 = vpop.f32.mrf.mxu0 }
 0x102   : > { %v925_v37 = vpop.f32.mrf.mxu2 }
 0x103   : > { %v1037_v51 = vpop.f32.mrf.mxu3 }
 0x10e   : > { %v1100_v2 = vpop.f32.mrf.mxu0 }
 0x10f   : > { %v1109_v60 = vadd.f32 %v1100_v2, %v1039_v53 }
 0x111   : > { %v1133_v34 = vadd.f32 %v1126_v58, %v1109_v60 }
 0x112   : > { %v1105_v63 = vpop.f32.mrf.mxu2 }
 0x113   : > { %v1135_v62 = vmax.f32 %v1133_v34, 0.0  ;;  %v1111_v12 = vadd.f32 %v1105_v63, %v1041_v59 }
 0x115   : > { %v1174_v1 = vsel %vm1828_vm12, %v1135_v62, 0.0  ;;  %v1118_v4 = vadd.f32 %v1116_v0, %v1111_v12 }
 0x116   : > { %v1102_v6 = vpop.f32.mrf.mxu0  ;;  %v1177_v14 = vsel %vm1176_vm14, %v1174_v1, 0.0 }
 0x117   : > { %v1110_v8 = vadd.f32 %v1102_v6, %v1040_v22  ;;  %1120 = vst.msk [vmem:[%s283_s11] sm:$0xf] %vm1119_vm13, %v1118_v4 }
 0x119   : > { %v1134_v9 = vadd.f32 %v1131_v7, %v1110_v8 }
 0x11a   : > { %v1107_v55 = vpop.f32.mrf.mxu2 }
 0x11b   : > { %v1136_v10 = vmax.f32 %v1134_v9, 0.0 }
 0x11d   : > { %v1175_v11 = vsel %vm1828_vm12, %v1136_v10, 0.0 }
 0x11e   : > { %v1180_v13 = vsel %vm1176_vm14, %v1175_v11, 0.0 }
 0x11f   : > { %1181 = vadd.xlane.f32.xlu1 %v1180_v13 }
 0x127   : > { %1178 = vadd.xlane.f32.xlu1 %v1177_v14 }
 0x192   : > { %v1182_v16 = vpop.xlane.xlu1 %1181 }
 0x193   : > { %v1184_v17 = vmul.f32 0.015625, %v1182_v16 }
 0x195   : > { %1205 = vmatpush.msra.mxu1 %v1184_v17 }
 0x19a   : > { %v1179_v19 = vpop.xlane.xlu1 %1178 }
 0x19b   : > { %v1183_v15 = vmul.f32 0.015625, %v1179_v19 }
 0x19d   : > { %1206 = vmatpush.msra.mxu1 %v1183_v15 }
 0x19e   : > { %1431 = vmatmul.msk.f32.vlgmr.msra.gmra.mxu1 %vm1187_vm15, %v1185_v21 }
 0x21b   : > { %v1208_v23 = vpop.f32.mrf.mxu1 }
 0x21c   : > { %v1209_v5 = vadd.f32 %v1208_v23, %v1186_v48 }
 0x21e   : > { %1212 = vst.msk [vmem:[%s287_s19] sm:$0xff] %vm1211_vm0, %v1209_v5 }
 0x21f PF: > { %s18_s24 = sadd.s32 1, %s1485_s24  }
 0x220   : > { %p15_p4 = scmp.ge.s32.totalorder %s18_s24, 4  }
 0x222   :  { %17 = sbr.rel (!%p15_p4) target bundleno = 1 (0x1), region = 94 }

</bundles_post_ra>
